<compile_context>
chip_gen: v7x
topology: tpu7x:2x2x1
jax: 0.10.0
libtpu: 0.0.40
codegen_flags: <defaults>
</compile_context>

<pallas_src>
import jax
import jax.numpy as jnp
from jax.experimental import pallas as pl
from jax.experimental.pallas import tpu as pltpu


def fasttext_kernel(tok_ref, v_ref, b_ref, out_ref):
    # tok_ref : (TB, L) int32   token ids for TB batch rows
    # v_ref   : (1, V)  float32 precomputed w_emb @ w_lin (projected embeddings)
    # b_ref   : (1, 1)  float32 linear bias, in SMEM
    # out_ref : (TB, 1) float32
    tok = tok_ref[...]                       # (TB, L)
    TB, L = tok.shape
    V = v_ref.shape[1]
    inv = 1.0 / float(2 * L - 1)             # mean over the 2L-1 concatenated rows

    vocab_iota = jax.lax.broadcasted_iota(jnp.int32, (TB, V), 1)

    # Weighted token counts.  Position weights encode
    #   3*sum(e) - e[0] - e[L-1], pre-scaled by 1/(2L-1).
    # L is small and static -> unrolled compare + select + add (VPU only,
    # no (L,V) one-hot matmul, no bigram tensor).
    counts = jnp.zeros((TB, V), jnp.float32)
    for l in range(L):
        w = (3.0 - float(l == 0) - float(l == L - 1)) * inv
        counts = counts + jnp.where(tok[:, l:l + 1] == vocab_iota, w, 0.0)

    # out[b] = counts[b, :] . v + bias   (VPU multiply + lane reduction)
    out = jnp.sum(counts * v_ref[...], axis=1, keepdims=True) + b_ref[0, 0]
    out_ref[...] = out.astype(out_ref.dtype)


def fasttext_forward(tokens, w_emb, w_lin, b_lin):
    B, L = tokens.shape
    V, D = w_emb.shape

    # Fold the output Linear weight into the embedding table (exact: the
    # forward is linear).  Per call we now DMA V floats instead of V*D.
    v = (w_emb.astype(jnp.float32) @ w_lin.astype(jnp.float32)).reshape(1, V)
    bias = jnp.asarray(b_lin, jnp.float32).reshape(1, 1)

    # Rows per grid step: sublane-aligned, capped so multiple grid steps exist
    # for large B (amortizes per-step overhead, feeds both TCs on v7x).
    TB = min(256, ((B + 7) // 8) * 8)
    nb = pl.cdiv(B, TB)
    B_pad = nb * TB
    tokens = tokens.astype(jnp.int32)
    if B_pad != B:
        tokens = jnp.pad(tokens, ((0, B_pad - B), (0, 0)))

    out = pl.pallas_call(
        fasttext_kernel,
        out_shape=jax.ShapeDtypeStruct((B_pad, 1), jnp.float32),
        grid_spec=pltpu.PrefetchScalarGridSpec(
            num_scalar_prefetch=0,
            grid=(nb,),
            in_specs=[
                pl.BlockSpec((TB, L), lambda i: (i, 0)),            # tokens
                pl.BlockSpec((1, V), lambda i: (0, 0)),             # v (resident)
                pl.BlockSpec(memory_space=pltpu.MemorySpace.SMEM),  # bias scalar
            ],
            out_specs=pl.BlockSpec((TB, 1), lambda i: (i, 0)),      # sublane-dense
        ),
        compiler_params=pltpu.CompilerParams(
            dimension_semantics=("parallel",)),
    )(tokens, v, bias)
    return out[:B]


def reference_forward(tokens, w_emb, w_lin, b_lin):
    e = w_emb[tokens]                                   # (B, L, D)
    n = e[:, :-1] + e[:, 1:]                            # (B, L-1, D)
    y = jnp.concatenate([e, n], axis=1).mean(axis=1)    # (B, D)
    return y @ w_lin + b_lin                            # (B, 1)


if __name__ == "__main__":
    key = jax.random.PRNGKey(0)
    k_emb, k_lin, k_b, k_tok = jax.random.split(key, 4)

    B, L = 2, 8           # batch, sequence length
    V, D = 32, 32         # vocab_size, embedding_dim
    unk_index, pad_index = 0, 1

    # Embedding weight ~ N(0, 1) like torch.nn.Embedding; zero unk/pad rows.
    w_emb = jax.random.normal(k_emb, (V, D), dtype=jnp.float32)
    w_emb = w_emb.at[unk_index].set(0.0).at[pad_index].set(0.0)

    # Linear(D, 1): uniform(-1/sqrt(D), 1/sqrt(D)) like torch default.
    bound = 1.0 / (D ** 0.5)
    w_lin = jax.random.uniform(k_lin, (D, 1), jnp.float32, -bound, bound)
    b_lin = jax.random.uniform(k_b, (1,), jnp.float32, -bound, bound)

    tokens = jax.random.randint(k_tok, (B, L), 0, V, dtype=jnp.int32)

    out = fasttext_forward(tokens, w_emb, w_lin, b_lin)
    out = jax.block_until_ready(out)

    ref = reference_forward(tokens, w_emb, w_lin, b_lin)
    assert out.shape == (B, 1), out.shape
    assert jnp.allclose(out, ref, atol=1e-5, rtol=1e-5), (out, ref)

    print("KERNEL_OK")
</pallas_src>

<mosaic_0001>
module attributes {stable_mosaic.version = 11 : i64} {
  func.func @fasttext_kernel(%arg0: i32, %arg1: memref<8x8xi32, #tpu.memory_space<vmem>>, %arg2: memref<1x32xf32, #tpu.memory_space<vmem>>, %arg3: memref<1x1xf32, #tpu.memory_space<smem>>, %arg4: memref<8x1xf32, #tpu.memory_space<vmem>>) attributes {dimension_semantics = [#tpu.dimension_semantics<parallel>], iteration_bounds = array<i64: 1>, scalar_prefetch = 0 : i64, scratch_operands = 0 : i64, tpu.core_type = #tpu.core_type<tc>, window_params = [{transform_indices = @transform_0, window_bounds = array<i64: 8, 8>}, {pipeline_mode = #tpu.pipeline_mode<synchronous>, transform_indices = @transform_1, window_bounds = array<i64: 1, 32>}, {transform_indices = @transform_2, window_bounds = array<i64: 1, 1>}, {transform_indices = @transform_3, window_bounds = array<i64: 8, 1>}]} {
    %c0 = arith.constant 0 : index
    %c0_0 = arith.constant 0 : index
    %0 = vector.load %arg1[%c0, %c0_0] : memref<8x8xi32, #tpu.memory_space<vmem>>, vector<8x8xi32>
    %1 = tpu.iota {dimensions = array<i32: 1>} : vector<8x32xi32>
    %cst = arith.constant 0.000000e+00 : f32
    %2 = vector.broadcast %cst : f32 to vector<8x32xf32>
    %3 = vector.extract_strided_slice %0 {offsets = [0, 0], sizes = [8, 1], strides = [1, 1]} : vector<8x8xi32> to vector<8x1xi32>
    %4 = vector.broadcast %3 : vector<8x1xi32> to vector<8x32xi32>
    %5 = arith.cmpi eq, %4, %1 : vector<8x32xi32>
    %cst_1 = arith.constant 0.13333334 : f32
    %cst_2 = arith.constant 0.000000e+00 : f32
    %6 = vector.broadcast %cst_1 : f32 to vector<8x32xf32>
    %7 = vector.broadcast %cst_2 : f32 to vector<8x32xf32>
    %8 = arith.select %5, %6, %7 : vector<8x32xi1>, vector<8x32xf32>
    %9 = arith.addf %2, %8 : vector<8x32xf32>
    %10 = vector.extract_strided_slice %0 {offsets = [0, 1], sizes = [8, 1], strides = [1, 1]} : vector<8x8xi32> to vector<8x1xi32>
    %11 = vector.broadcast %10 : vector<8x1xi32> to vector<8x32xi32>
    %12 = arith.cmpi eq, %11, %1 : vector<8x32xi32>
    %cst_3 = arith.constant 2.000000e-01 : f32
    %cst_4 = arith.constant 0.000000e+00 : f32
    %13 = vector.broadcast %cst_3 : f32 to vector<8x32xf32>
    %14 = vector.broadcast %cst_4 : f32 to vector<8x32xf32>
    %15 = arith.select %12, %13, %14 : vector<8x32xi1>, vector<8x32xf32>
    %16 = arith.addf %9, %15 : vector<8x32xf32>
    %17 = vector.extract_strided_slice %0 {offsets = [0, 2], sizes = [8, 1], strides = [1, 1]} : vector<8x8xi32> to vector<8x1xi32>
    %18 = vector.broadcast %17 : vector<8x1xi32> to vector<8x32xi32>
    %19 = arith.cmpi eq, %18, %1 : vector<8x32xi32>
    %cst_5 = arith.constant 2.000000e-01 : f32
    %cst_6 = arith.constant 0.000000e+00 : f32
    %20 = vector.broadcast %cst_5 : f32 to vector<8x32xf32>
    %21 = vector.broadcast %cst_6 : f32 to vector<8x32xf32>
    %22 = arith.select %19, %20, %21 : vector<8x32xi1>, vector<8x32xf32>
    %23 = arith.addf %16, %22 : vector<8x32xf32>
    %24 = vector.extract_strided_slice %0 {offsets = [0, 3], sizes = [8, 1], strides = [1, 1]} : vector<8x8xi32> to vector<8x1xi32>
    %25 = vector.broadcast %24 : vector<8x1xi32> to vector<8x32xi32>
    %26 = arith.cmpi eq, %25, %1 : vector<8x32xi32>
    %cst_7 = arith.constant 2.000000e-01 : f32
    %cst_8 = arith.constant 0.000000e+00 : f32
    %27 = vector.broadcast %cst_7 : f32 to vector<8x32xf32>
    %28 = vector.broadcast %cst_8 : f32 to vector<8x32xf32>
    %29 = arith.select %26, %27, %28 : vector<8x32xi1>, vector<8x32xf32>
    %30 = arith.addf %23, %29 : vector<8x32xf32>
    %31 = vector.extract_strided_slice %0 {offsets = [0, 4], sizes = [8, 1], strides = [1, 1]} : vector<8x8xi32> to vector<8x1xi32>
    %32 = vector.broadcast %31 : vector<8x1xi32> to vector<8x32xi32>
    %33 = arith.cmpi eq, %32, %1 : vector<8x32xi32>
    %cst_9 = arith.constant 2.000000e-01 : f32
    %cst_10 = arith.constant 0.000000e+00 : f32
    %34 = vector.broadcast %cst_9 : f32 to vector<8x32xf32>
    %35 = vector.broadcast %cst_10 : f32 to vector<8x32xf32>
    %36 = arith.select %33, %34, %35 : vector<8x32xi1>, vector<8x32xf32>
    %37 = arith.addf %30, %36 : vector<8x32xf32>
    %38 = vector.extract_strided_slice %0 {offsets = [0, 5], sizes = [8, 1], strides = [1, 1]} : vector<8x8xi32> to vector<8x1xi32>
    %39 = vector.broadcast %38 : vector<8x1xi32> to vector<8x32xi32>
    %40 = arith.cmpi eq, %39, %1 : vector<8x32xi32>
    %cst_11 = arith.constant 2.000000e-01 : f32
    %cst_12 = arith.constant 0.000000e+00 : f32
    %41 = vector.broadcast %cst_11 : f32 to vector<8x32xf32>
    %42 = vector.broadcast %cst_12 : f32 to vector<8x32xf32>
    %43 = arith.select %40, %41, %42 : vector<8x32xi1>, vector<8x32xf32>
    %44 = arith.addf %37, %43 : vector<8x32xf32>
    %45 = vector.extract_strided_slice %0 {offsets = [0, 6], sizes = [8, 1], strides = [1, 1]} : vector<8x8xi32> to vector<8x1xi32>
    %46 = vector.broadcast %45 : vector<8x1xi32> to vector<8x32xi32>
    %47 = arith.cmpi eq, %46, %1 : vector<8x32xi32>
    %cst_13 = arith.constant 2.000000e-01 : f32
    %cst_14 = arith.constant 0.000000e+00 : f32
    %48 = vector.broadcast %cst_13 : f32 to vector<8x32xf32>
    %49 = vector.broadcast %cst_14 : f32 to vector<8x32xf32>
    %50 = arith.select %47, %48, %49 : vector<8x32xi1>, vector<8x32xf32>
    %51 = arith.addf %44, %50 : vector<8x32xf32>
    %52 = vector.extract_strided_slice %0 {offsets = [0, 7], sizes = [8, 1], strides = [1, 1]} : vector<8x8xi32> to vector<8x1xi32>
    %53 = vector.broadcast %52 : vector<8x1xi32> to vector<8x32xi32>
    %54 = arith.cmpi eq, %53, %1 : vector<8x32xi32>
    %cst_15 = arith.constant 0.13333334 : f32
    %cst_16 = arith.constant 0.000000e+00 : f32
    %55 = vector.broadcast %cst_15 : f32 to vector<8x32xf32>
    %56 = vector.broadcast %cst_16 : f32 to vector<8x32xf32>
    %57 = arith.select %54, %55, %56 : vector<8x32xi1>, vector<8x32xf32>
    %58 = arith.addf %51, %57 : vector<8x32xf32>
    %c0_17 = arith.constant 0 : index
    %c0_18 = arith.constant 0 : index
    %59 = vector.load %arg2[%c0_17, %c0_18] : memref<1x32xf32, #tpu.memory_space<vmem>>, vector<1x32xf32>
    %60 = vector.broadcast %59 : vector<1x32xf32> to vector<8x32xf32>
    %61 = arith.mulf %58, %60 : vector<8x32xf32>
    %cst_19 = arith.constant dense<0.000000e+00> : vector<8xf32>
    %62 = vector.multi_reduction <add>, %61, %cst_19 [1] : vector<8x32xf32> to vector<8xf32>
    %63 = vector.shape_cast %62 : vector<8xf32> to vector<8x1xf32>
    %c0_20 = arith.constant 0 : index
    %c0_21 = arith.constant 0 : index
    %64 = memref.load %arg3[%c0_20, %c0_21] : memref<1x1xf32, #tpu.memory_space<smem>>
    %65 = vector.broadcast %64 : f32 to vector<8x1xf32>
    %66 = arith.addf %63, %65 : vector<8x1xf32>
    %c0_22 = arith.constant 0 : index
    %c0_23 = arith.constant 0 : index
    %67 = vector.load %arg4[%c0_22, %c0_23] : memref<8x1xf32, #tpu.memory_space<vmem>>, vector<8x1xf32>
    tpu.vector_store %arg4[%c0_22, %c0_23], %66 {strides = array<i32>} : memref<8x1xf32, #tpu.memory_space<vmem>>, vector<8x1xf32>,
    return
  }
  func.func @transform_0(%arg0: i32) -> (i32, i32) {
    %c0_i32 = arith.constant 0 : i32
    %c0_i32_0 = arith.constant 0 : i32
    return %arg0, %c0_i32 : i32, i32
  }
  func.func @transform_1(%arg0: i32) -> (i32, i32) {
    %c0_i32 = arith.constant 0 : i32
    %c0_i32_0 = arith.constant 0 : i32
    %c0_i32_1 = arith.constant 0 : i32
    return %c0_i32, %c0_i32_0 : i32, i32
  }
  func.func @transform_2(%arg0: i32) -> (i32, i32) {
    %c0_i32 = arith.constant 0 : i32
    %c0_i32_0 = arith.constant 0 : i32
    %c0_i32_1 = arith.constant 0 : i32
    return %c0_i32, %c0_i32_0 : i32, i32
  }
  func.func @transform_3(%arg0: i32) -> (i32, i32) {
    %c0_i32 = arith.constant 0 : i32
    %c0_i32_0 = arith.constant 0 : i32
    return %arg0, %c0_i32 : i32, i32
  }
}

</mosaic_0001>

<bundles_post_ra>
// kernel: tpu_custom_call.1
= control target key start
LH: loop header
LB: loop body
LE: loop exit
PB: predicated region body
PF: predicated region fallthrough
CT: control target
= control target key end

     0   :  { %9 = vsyncpa [#allocation4], 0  ;;  %s144_s12 = smov [#allocation3]   ;;  %s195_s0 = inlined_call_operand.hbm [shape: s32[8,8], index: 0, kind: input, shape index: {}]   ;;  %s196_s1 = inlined_call_operand.vmem [shape: f32[1,32], index: 1, kind: input, shape index: {}]   ;;  %s197_s2 = inlined_call_operand.<no memory space> [shape: f32[1,1], index: 2, kind: input, shape index: {}]   ;;  %s198_s3 = inlined_call_operand.vmem [shape: f32[8,1], index: 3, kind: output, shape index: {}]  }
   0x1   :  { %s16_s13 = sshll.u32 %s144_s12, 4  ;;  %s120_s16 = scalar_lea.hbm %s195_s0, 128  ;;  %s17_s13 = int_to_ptr.vmem [resolvable:$true] %s16_s13 }
   0x2   :  { %p121_p0 = scmp.ne.s32.totalorder %s195_s0, %s120_s16  ;;  %p124_p1 = scmp.lt.u32.totalorder %s120_s16, %s195_s0 }
   0x4   :  { %p126_p2 = pnand %p124_p1, %p121_p0 }
   0x6   :  { %129 = shalt.err (!%p126_p2)
}
   0x7   :  { %s130_s21 = scalar_lea.vmem %s17_s13, 128  ;;  %p135_p4 = scmp.lt.s32.totalorder %s17_s13, %s17_s13 }
   0x8   :  { %p131_p3 = scmp.ne.s32.totalorder %s17_s13, %s130_s21  ;;  %p136_p5 = scmp.lt.s32.totalorder %s130_s21, %s130_s21 }
   0xa   :  { %p137_p6 = por %p136_p5, %p135_p4 }
   0xc   :  { %p138_p7 = pnand %p137_p6, %p131_p3 }
   0xe   :  { %141 = shalt.err (!%p138_p7)
}
   0xf   :  { %19 = dma.hbm_to_vmem [thread:$0]  %s195_s0, 128, %s17_s13, [#allocation4]  }
  0x10   :  { %142 = dma.done.wait [#allocation4], 128  }
  0x11   :  { %143 = vsyncadd [#allocation4], 4294967168  ;;  %v145_v0 = vmov 2   ;;  %v146_v1 = vmov 0   ;;  %v27_v2 = vld [vmem:[#allocation3] sm:$0xff]  ;;  %v147_v3 = vmov 3   ;;  %v28_v9 = vlaneseq }
  0x12   :  { %113 = vset.pattern.permute.xlu1 %v145_v0  ;;  %111 = vset.pattern.permute.xlu0 %v146_v1  ;;  %v148_v4 = vmov 1   ;;  %v149_v5 = vmov 4   ;;  %v150_v6 = vmov 5   ;;  %v151_v7 = vmov 6   ;;  %v100_v34 = vld [vmem:[%s196_s1] ss:$0 sm:$0xff] }
  0x13   :  { %43 = vperm.xlu1 %113, %v27_v2   ;;  %31 = vperm.xlu0 %111, %v27_v2   ;;  %v152_v8 = vmov 7   ;;  %v29_v12 = vand.u32 127, %v28_v9  ;;  %v153_v15 = vmov 0.0   ;;  %vm86_vm8 = vcmask 261120  }
  0x14   :  { %v91_v38 = vstv %s197_s2  ;;  %vm93_vm9 = vcmask 7168  }
  0x17   :  { %114 = vset.pattern.permute.xlu1 %v147_v3  ;;  %112 = vset.pattern.permute.xlu0 %v148_v4 }
  0x18   :  { %49 = vperm.xlu1 %114, %v27_v2   ;;  %37 = vperm.xlu0 %112, %v27_v2  }
  0x1c   :  { %115 = vset.pattern.permute.xlu1 %v149_v5  ;;  %116 = vset.pattern.permute.xlu0 %v150_v6 }
  0x1d   :  { %55 = vperm.xlu1 %115, %v27_v2   ;;  %61 = vperm.xlu0 %116, %v27_v2  }
  0x21   :  { %117 = vset.pattern.permute.xlu1 %v151_v7  ;;  %119 = vset.pattern.permute.xlu0 %v152_v8 }
  0x22   :  { %67 = vperm.xlu1 %117, %v27_v2  }
  0x26   :  { %118 = vset.pattern.permute.xlu1 %v152_v8 }
  0x27   :  { %73 = vperm.xlu1 %118, %v27_v2  }
  0x92   :  { %v44_v10 = vpop.permute.xlu1 %43  ;;  %v32_v11 = vpop.permute.xlu0 %31 }
  0x93   :  { %vm33_vm0 = vcmp.eq.s32.totalorder %v32_v11, %v29_v12  ;;  %vm45_vm1 = vcmp.eq.s32.totalorder %v44_v10, %v29_v12 }
  0x94   :  { %v34_v16 = vsel %vm33_vm0, 0.13333334, %v153_v15  ;;  %v46_v19 = vsel %vm45_vm1, 0.2, %v153_v15 }
  0x97   :  { %v50_v13 = vpop.permute.xlu1 %49  ;;  %v38_v14 = vpop.permute.xlu0 %37 }
  0x98   :  { %vm39_vm2 = vcmp.eq.s32.totalorder %v38_v14, %v29_v12  ;;  %vm51_vm3 = vcmp.eq.s32.totalorder %v50_v13, %v29_v12 }
  0x99   :  { %v40_v17 = vsel %vm39_vm2, 0.2, %v153_v15  ;;  %v52_v23 = vsel %vm51_vm3, 0.2, %v153_v15 }
  0x9a   :  { %v41_v18 = vadd.f32 %v40_v17, %v34_v16 }
  0x9c   :  { %v47_v20 = vadd.f32 %v46_v19, %v41_v18  ;;  %v56_v21 = vpop.permute.xlu1 %55  ;;  %v62_v22 = vpop.permute.xlu0 %61 }
  0x9d   :  { %vm57_vm4 = vcmp.eq.s32.totalorder %v56_v21, %v29_v12  ;;  %vm63_vm5 = vcmp.eq.s32.totalorder %v62_v22, %v29_v12 }
  0x9e   :  { %v53_v24 = vadd.f32 %v52_v23, %v47_v20  ;;  %v58_v25 = vsel %vm57_vm4, 0.2, %v153_v15  ;;  %v64_v27 = vsel %vm63_vm5, 0.2, %v153_v15 }
  0xa0   :  { %v59_v26 = vadd.f32 %v58_v25, %v53_v24 }
  0xa1   :  { %v68_v28 = vpop.permute.xlu1 %67 }
  0xa2   :  { %vm69_vm6 = vcmp.eq.s32.totalorder %v68_v28, %v29_v12  ;;  %v65_v29 = vadd.f32 %v64_v27, %v59_v26 }
  0xa3   :  { %v70_v30 = vsel %vm69_vm6, 0.2, %v153_v15 }
  0xa4   :  { %v71_v32 = vadd.f32 %v70_v30, %v65_v29 }
  0xa6   :  { %v74_v31 = vpop.permute.xlu1 %73 }
  0xa7   :  { %vm75_vm7 = vcmp.eq.s32.totalorder %v74_v31, %v29_v12 }
  0xa8   :  { %v76_v33 = vsel %vm75_vm7, 0.13333334, %v153_v15 }
  0xa9   :  { %v77_v35 = vadd.f32 %v76_v33, %v71_v32 }
  0xab   :  { %v85_v36 = vmul.f32 %v100_v34, %v77_v35 }
  0xad   :  { %v87_v37 = vsel %vm86_vm8, %v85_v36, 0.0 }
  0xae   :  { %88 = vadd.xlane.f32.xlu0 %v87_v37 }
 0x13b   :  { %v89_v39 = vpop.xlane.xlu0 %88 }
 0x13c   :  { %v92_v40 = vadd.f32 %v91_v38, %v89_v39 }
 0x13e   :  { %94 = vst.msk [vmem:[%s198_s3] sm:$0xff] %vm93_vm9, %v92_v40 }
 0x13f   :  { %99 = vsyncpa [#allocation4], 1 }

</bundles_post_ra>
